<compile_context>
chip_gen: v5e
topology: v5e:2x2
jax: 0.10.0
libtpu: 0.0.40
codegen_flags: <defaults>
</compile_context>

<pallas_src>
import functools
import math

import jax
import jax.numpy as jnp
from jax.experimental import pallas as pl
from jax.experimental.pallas import tpu as pltpu

BITS = 8                       # quantization bit-width (compile-time constant)
_LANE_WIDTH = 512              # preferred lane-dense slab width (multiple of 128)
_MAX_BLOCK_ROWS = 2048         # (2048, 512) f32 block = 4 MiB
_MIN_BLOCK_ROWS = 256          # keep blocks >= ~512 KiB (f32)
_TARGET_STEPS = 8              # aim for a few steps -> pipeline steady state
_PALLAS_MIN_ELEMS = 128 * 1024 # below this, launch overhead dominates -> pure JAX


def _sublane(dtype):
    """Sublane granularity: 8 rows for 32-bit, 16 for 16-bit, 32 for 8-bit."""
    bits = jnp.dtype(dtype).itemsize * 8
    return max(8, 256 // bits)


def _choose_grid(rows, sub):
    """Pick (num_blocks, block_rows) for a (rows, lane) slab.

    block_rows is a multiple of `sub` (or the full extent for a single block);
    the last block may overhang `rows` - Pallas masks the out-of-range writes.
    """
    if rows <= max(_MIN_BLOCK_ROWS, 2 * sub):
        return 1, rows                                   # single full-extent block
    nb = min(_TARGET_STEPS, max(rows // _MIN_BLOCK_ROWS, 2))
    nb = max(nb, pl.cdiv(rows, _MAX_BLOCK_ROWS))
    if nb & 1:
        nb += 1                                          # even -> 2-TC split on v7x
    block_rows = pl.cdiv(pl.cdiv(rows, nb), sub) * sub
    num_blocks = pl.cdiv(rows, block_rows)
    return num_blocks, block_rows


def _tanh_quantize_kernel(x_ref, o_ref, *, bits):
    x = x_ref[...].astype(jnp.float32)
    if bits == 1:
        out = jnp.sign(x)
    else:
        n = float(2 ** bits - 1)
        t = jnp.tanh(x)                              # EUP
        q = jnp.floor((t + 1.0) * 0.5 * n + 0.5)     # integer level in [0, n]
        # arctanh(2*q/n - 1) == 0.5*(log(q) - log(n-q)); exact in q, saturates to
        # +/-inf at q == n / q == 0 exactly like the reference.  Keep in f32.
        out = 0.5 * (jnp.log(q) - jnp.log(n - q))
    o_ref[...] = out.astype(o_ref.dtype)


def _tanh_quantize_jax(x, bits):
    """Fused pure-JAX path (tiny tensors / tail epilogue)."""
    x = x.astype(jnp.float32)
    if bits == 1:
        return jnp.sign(x)
    n = float(2 ** bits - 1)
    q = jnp.floor((jnp.tanh(x) + 1.0) * 0.5 * n + 0.5)
    return 0.5 * (jnp.log(q) - jnp.log(n - q))


def normal_quant(x, bits=BITS, *, force_pallas=False):
    """NormalQuant forward: tanh_quantize(x, bits), elementwise, any shape."""
    assert bits >= 1
    orig_shape = x.shape
    orig_dtype = x.dtype
    n_elems = int(x.size)

    if n_elems == 0:
        return x
    if not force_pallas and n_elems < _PALLAS_MIN_ELEMS:
        # Tiny tensor: launch + reshape overhead dwarfs the work -> fused JAX.
        return _tanh_quantize_jax(x, bits).astype(orig_dtype)

    flat = x.reshape(-1)
    sub = _sublane(orig_dtype)

    # Pick the widest lane width that divides numel -> whole tensor in-kernel,
    # no pad, no tail.  (Common case: activation numel is a multiple of 128.)
    lane = None
    for cand in (512, 256, 128):
        if n_elems % cand == 0:
            lane = cand
            break

    tail = None
    if lane is not None:
        rows = n_elems // lane
        main = flat
    else:
        lane = _LANE_WIDTH
        rows = n_elems // lane
        if rows > 0:
            # Kernel handles the largest lane-divisible prefix; the <512-element
            # remainder goes through a tiny pure-JAX epilogue (no full-tensor
            # pad/slice passes around the memory-bound kernel).
            main = flat[: rows * lane]
            tail = flat[rows * lane:]
        else:
            # Forced Pallas on a sub-row input (demo/testing only): minimal pad.
            lane = 128
            rows = pl.cdiv(n_elems, lane)
            pad = rows * lane - n_elems
            main = jnp.concatenate([flat, jnp.zeros((pad,), flat.dtype)]) if pad else flat

    num_blocks, block_rows = _choose_grid(rows, sub)
    x2d = main.reshape(rows, lane)

    out2d = pl.pallas_call(
        functools.partial(_tanh_quantize_kernel, bits=bits),
        out_shape=jax.ShapeDtypeStruct((rows, lane), orig_dtype),
        grid_spec=pltpu.PrefetchScalarGridSpec(
            num_scalar_prefetch=0,
            grid=(num_blocks,),
            in_specs=[pl.BlockSpec((block_rows, lane), lambda i: (i, 0))],
            out_specs=pl.BlockSpec((block_rows, lane), lambda i: (i, 0)),
        ),
        compiler_params=pltpu.CompilerParams(
            dimension_semantics=("parallel",),
            # <=4 MiB blocks, double-buffered in+out <= 16 MiB; 32 MiB cap is safe
            # on v5e/v6e (128 MiB physical) and v7x (64 MiB physical per TC).
            vmem_limit_bytes=32 * 1024 * 1024,
        ),
    )(x2d)

    out_flat = out2d.reshape(-1)
    if tail is not None and tail.size:
        tail_out = _tanh_quantize_jax(tail, bits).astype(orig_dtype)
        out_flat = jnp.concatenate([out_flat, tail_out])
    if out_flat.shape[0] != n_elems:
        out_flat = out_flat[:n_elems]
    return out_flat.reshape(orig_shape)


def _tanh_quantize_ref(x, bits):
    """Pure-JAX reference mirroring the PyTorch tanh_quantize exactly."""
    x = x.astype(jnp.float32)
    if bits == 1:
        return jnp.sign(x)
    t = jnp.tanh(x)
    r = (t + 1.0) / 2.0
    n = math.pow(2.0, bits) - 1.0
    v = jnp.floor(r * n + 0.5) / n
    v = 2.0 * v - 1.0
    return 0.5 * jnp.log((1.0 + v) / (1.0 - v))


if __name__ == "__main__":
    key = jax.random.PRNGKey(0)
    k1, k2, k3 = jax.random.split(key, 3)

    # (1) tiny NCHW activation: default path (pure-JAX, below Pallas threshold)
    #     and the same input forced through Pallas (divisible -> single block).
    x_small = jax.random.normal(k1, (2, 4, 16, 16), dtype=jnp.float32)
    out_small_default = jax.block_until_ready(normal_quant(x_small, BITS))
    out_small_pallas = jax.block_until_ready(
        normal_quant(x_small, BITS, force_pallas=True))

    # (2) odd-sized activation: Pallas prefix + tiny pure-JAX tail epilogue.
    x_odd = jax.random.normal(k2, (3, 5, 17, 19), dtype=jnp.float32)
    out_odd = jax.block_until_ready(normal_quant(x_odd, BITS, force_pallas=True))

    # (3) activation large enough for a 2-step parallel grid with a masked
    #     (partial) last block.
    x_med = jax.random.normal(k3, (5, 58, 16, 32), dtype=jnp.float32)
    out_med = jax.block_until_ready(normal_quant(x_med, BITS, force_pallas=True))

    for x_in, out in ((x_small, out_small_default), (x_small, out_small_pallas),
                      (x_odd, out_odd), (x_med, out_med)):
        ref = _tanh_quantize_ref(x_in, BITS)
        assert out.shape == x_in.shape and out.dtype == x_in.dtype
        assert jnp.allclose(out, ref, atol=1e-5, rtol=1e-5), "mismatch vs reference"

    print("KERNEL_OK")
</pallas_src>

<mosaic_0001>
module attributes {stable_mosaic.version = 11 : i64} {
  func.func @_tanh_quantize_kernel(%arg0: i32, %arg1: memref<4x512xf32, #tpu.memory_space<vmem>>, %arg2: memref<4x512xf32, #tpu.memory_space<vmem>>) attributes {dimension_semantics = [#tpu.dimension_semantics<parallel>], iteration_bounds = array<i64: 1>, scalar_prefetch = 0 : i64, scratch_operands = 0 : i64, tpu.core_type = #tpu.core_type<tc>, window_params = [{transform_indices = @transform_0, window_bounds = array<i64: 4, 512>}, {transform_indices = @transform_1, window_bounds = array<i64: 4, 512>}]} {
    %c0 = arith.constant 0 : index
    %c0_0 = arith.constant 0 : index
    %0 = vector.load %arg1[%c0, %c0_0] : memref<4x512xf32, #tpu.memory_space<vmem>>, vector<4x512xf32>
    %1 = math.tanh %0 : vector<4x512xf32>
    %cst = arith.constant 1.000000e+00 : f32
    %2 = vector.broadcast %cst : f32 to vector<4x512xf32>
    %3 = arith.addf %1, %2 : vector<4x512xf32>
    %cst_1 = arith.constant 5.000000e-01 : f32
    %4 = vector.broadcast %cst_1 : f32 to vector<4x512xf32>
    %5 = arith.mulf %3, %4 : vector<4x512xf32>
    %cst_2 = arith.constant 2.550000e+02 : f32
    %6 = vector.broadcast %cst_2 : f32 to vector<4x512xf32>
    %7 = arith.mulf %5, %6 : vector<4x512xf32>
    %cst_3 = arith.constant 5.000000e-01 : f32
    %8 = vector.broadcast %cst_3 : f32 to vector<4x512xf32>
    %9 = arith.addf %7, %8 : vector<4x512xf32>
    %10 = math.floor %9 : vector<4x512xf32>
    %11 = math.log %10 : vector<4x512xf32>
    %cst_4 = arith.constant 2.550000e+02 : f32
    %12 = vector.broadcast %cst_4 : f32 to vector<4x512xf32>
    %13 = arith.subf %12, %10 : vector<4x512xf32>
    %14 = math.log %13 : vector<4x512xf32>
    %15 = arith.subf %11, %14 : vector<4x512xf32>
    %cst_5 = arith.constant 5.000000e-01 : f32
    %16 = vector.broadcast %cst_5 : f32 to vector<4x512xf32>
    %17 = arith.mulf %16, %15 : vector<4x512xf32>
    %c0_6 = arith.constant 0 : index
    %c0_7 = arith.constant 0 : index
    %18 = vector.load %arg2[%c0_6, %c0_7] : memref<4x512xf32, #tpu.memory_space<vmem>>, vector<4x512xf32>
    tpu.vector_store %arg2[%c0_6, %c0_7], %17 {strides = array<i32>} : memref<4x512xf32, #tpu.memory_space<vmem>>, vector<4x512xf32>,
    return
  }
  func.func @transform_0(%arg0: i32) -> (i32, i32) {
    %c0_i32 = arith.constant 0 : i32
    %c0_i32_0 = arith.constant 0 : i32
    return %arg0, %c0_i32 : i32, i32
  }
  func.func @transform_1(%arg0: i32) -> (i32, i32) {
    %c0_i32 = arith.constant 0 : i32
    %c0_i32_0 = arith.constant 0 : i32
    return %arg0, %c0_i32 : i32, i32
  }
}

</mosaic_0001>

<bundles_post_ra>
// kernel: tpu_custom_call.1
= control target key start
LH: loop header
LB: loop body
LE: loop exit
PB: predicated region body
PF: predicated region fallthrough
CT: control target
= control target key end

     0   :  { %6 = vsyncpa [#allocation3], 0  ;;  %s154_s0 = inlined_call_operand.hbm [shape: f32[4,512], index: 0, kind: input, shape index: {}]   ;;  %s155_s1 = inlined_call_operand.hbm [shape: f32[4,512], index: 1, kind: output, shape index: {}]  }
   0x1   :  { %7 = vsyncpa [#allocation4], 0  ;;  %s13_s8 = sshll.u32 %s154_s0, 4  ;;  %s136_s9 = smov [#allocation2]   ;;  %s14_s8 = int_to_ptr.hbm [resolvable:$true] %s13_s8 }
   0x2   :  { %s15_s10 = sshll.u32 %s136_s9, 4  ;;  %s16_s10 = int_to_ptr.vmem [resolvable:$true] %s15_s10 }
   0x3   :  { %18 = dma.hbm_to_vmem [thread:$0]  %s14_s8, 256, %s16_s10, [#allocation3]  }
   0x4   :  { %132 = dma.done.wait [#allocation3], 256  }
   0x5   :  { %133 = vsyncadd [#allocation3], 4294967040  ;;  %v23_v0 = vld [vmem:[#allocation2] sm:$0xff]  ;;  %v24_v1 = vld [vmem:[#allocation2 + $0x8] sm:$0xff]  ;;  %s137_s0 = smov [#allocation5]   ;;  %s60_s14 = sshll.u32 %s155_s1, 4  ;;  %s61_s14 = int_to_ptr.hbm [resolvable:$true] %s60_s14 }
   0x6   :  { %72 = vtanh.f32 %v23_v0  ;;  %s58_s11 = sshll.u32 %s137_s0, 4  ;;  %s59_s11 = int_to_ptr.vmem [resolvable:$true] %s58_s11 }
   0x7   :  { %74 = vtanh.f32 %v24_v1 }
   0xc   :  { %v73_v2 = vpop.eup %72 }
   0xd   :  { %v75_v3 = vpop.eup %74  ;;  %v27_v4 = vadd.f32 1.0, %v73_v2 }
   0xe   :  { %v28_v5 = vadd.f32 1.0, %v75_v3 }
   0xf   :  { %v29_v6 = vmul.f32 0.5, %v27_v4 }
  0x10   :  { %v30_v7 = vmul.f32 0.5, %v28_v5 }
  0x11   :  { %v31_v8 = vmul.f32 255.0, %v29_v6 }
  0x12   :  { %v32_v9 = vmul.f32 255.0, %v30_v7 }
  0x13   :  { %v33_v10 = vadd.f32 0.5, %v31_v8 }
  0x14   :  { %v34_v11 = vadd.f32 0.5, %v32_v9 }
  0x15   :  { %v35_v12 = vfloor.f32 %v33_v10 }
  0x16   :  { %v36_v13 = vfloor.f32 %v34_v11 }
  0x17   :  { %76 = vlog2.f32 %v35_v12  ;;  %v41_v14 = vsub.f32 255.0, %v35_v12 }
  0x18   :  { %78 = vlog2.f32 %v36_v13  ;;  %v42_v15 = vsub.f32 255.0, %v36_v13 }
  0x19   :  { %80 = vlog2.f32 %v41_v14 }
  0x1a   :  { %82 = vlog2.f32 %v42_v15 }
  0x1d   :  { %v77_v16 = vpop.eup %76 }
  0x1e   :  { %v79_v17 = vpop.eup %78  ;;  %v38_v18 = vmul.f32 0.6931472, %v77_v16 }
  0x1f   :  { %v81_v19 = vpop.eup %80  ;;  %v40_v20 = vmul.f32 0.6931472, %v79_v17 }
  0x20   :  { %v83_v21 = vpop.eup %82  ;;  %v44_v22 = vmul.f32 0.6931472, %v81_v19 }
  0x21   :  { %v46_v23 = vmul.f32 0.6931472, %v83_v21 }
  0x22   :  { %v47_v24 = vsub.f32 %v38_v18, %v44_v22 }
  0x23   :  { %v48_v25 = vsub.f32 %v40_v20, %v46_v23 }
  0x24   :  { %v49_v26 = vmul.f32 0.5, %v47_v24 }
  0x25   :  { %v50_v27 = vmul.f32 0.5, %v48_v25 }
  0x26   :  { %51 = vst [vmem:[#allocation5] sm:$0xff] %v49_v26 }
  0x27   :  { %52 = vst [vmem:[#allocation5 + $0x8] sm:$0xff] %v50_v27 }
  0x28   :  { %63 = dma.vmem_to_hbm [thread:$0]  %s59_s11, 256, %s61_s14, [#allocation4]  }
  0x29   :  { %134 = dma.done.wait [#allocation4], 256  }
  0x2a   :  { %135 = vsyncadd [#allocation4], 4294967040 }
  0x2b   :  { %68 = vsyncpa [#allocation3], 1 }
  0x2c   :  { %69 = vsyncpa [#allocation4], 1 }

</bundles_post_ra>
